<compile_context>
chip_gen: v5e
topology: v5e:2x2
jax: 0.10.0
libtpu: 0.0.40
codegen_flags: <defaults>
</compile_context>

<pallas_src>
import numpy as np
import jax
import jax.numpy as jnp
from jax.experimental import pallas as pl
from jax.experimental.pallas import tpu as pltpu


def _timestep_embedder_kernel(ts_ref, pe_ref, w_ref, b_ref, o_ref):
    # ts_ref: VMEM [B, 1]  int32 (timestep indices)
    # pe_ref: VMEM [L, D]  f32   (sinusoidal table, singleton dim dropped)
    # w_ref : VMEM [2D, D] f32   (w1 stacked on w2, [in, out] layout)
    # b_ref : VMEM [2, D]  f32   (b1 stacked on b2)
    # o_ref : VMEM [B, D]  f32   (lane-dense; wrapper adds the leading axis)
    B, D = o_ref.shape
    L = pe_ref.shape[0]

    # One-hot MXU gather: x[b, :] = pe[ts[b], :].
    ts = ts_ref[...]                                             # [B, 1] int32
    col = jax.lax.broadcasted_iota(jnp.int32, (B, L), 1)         # [B, L]
    onehot = jnp.where(col == ts, jnp.float32(1.0), jnp.float32(0.0))
    x = jnp.dot(onehot, pe_ref[...],
                preferred_element_type=jnp.float32,
                precision=jax.lax.Precision.HIGHEST)             # [B, D]

    # Static sublane slices (D is a multiple of 8 -> clean, no lane shuffles).
    w1 = w_ref[:D, :]
    w2 = w_ref[D:, :]
    b1 = b_ref[0:1, :]
    b2 = b_ref[1:2, :]

    h = jnp.dot(x, w1, preferred_element_type=jnp.float32,
                precision=jax.lax.Precision.HIGHEST) + b1
    h = h * jax.nn.sigmoid(h)                                    # SiLU (f32 EUP path)
    y = jnp.dot(h, w2, preferred_element_type=jnp.float32,
                precision=jax.lax.Precision.HIGHEST) + b2
    o_ref[...] = y.astype(o_ref.dtype)


def timestep_embedder_forward(timesteps, pe, w_cat, b_cat):
    """Fused TimestepEmbedder.forward.

    timesteps: int32 [B]
    pe:        f32   [max_len, D]   (PyTorch buffer with the size-1 dim dropped)
    w_cat:     f32   [2D, D]        (Linear weights, [in, out], w1 over w2 —
                                     transpose PyTorch's [out, in] when loading)
    b_cat:     f32   [2, D]         (biases, b1 over b2)
    returns:   f32   [1, B, D]      (== PyTorch output after permute(1, 0, 2))

    Note: out-of-range timesteps produce a zero embedding row (one-hot gather
    has no match) rather than raising as PyTorch would; assert range upstream.
    """
    B = timesteps.shape[0]
    L, D = pe.shape
    ts2d = timesteps.reshape(B, 1).astype(jnp.int32)

    flops = 2 * B * D * (L + 2 * D) + 4 * B * D          # gather + 2 matmuls + bias/SiLU
    bytes_accessed = 4 * (B + L * D + 2 * D * D + 2 * D + B * D)

    out = pl.pallas_call(
        _timestep_embedder_kernel,
        out_shape=jax.ShapeDtypeStruct((B, D), jnp.float32),
        in_specs=[
            pl.BlockSpec(memory_space=pltpu.MemorySpace.VMEM),   # timesteps [B,1]
            pl.BlockSpec(memory_space=pltpu.MemorySpace.VMEM),   # pe table
            pl.BlockSpec(memory_space=pltpu.MemorySpace.VMEM),   # w_cat
            pl.BlockSpec(memory_space=pltpu.MemorySpace.VMEM),   # b_cat
        ],
        out_specs=pl.BlockSpec(memory_space=pltpu.MemorySpace.VMEM),
        cost_estimate=pl.CostEstimate(
            flops=flops,
            transcendentals=B * D,
            bytes_accessed=bytes_accessed,
        ),
    )(ts2d, pe, w_cat, b_cat)

    # Free layout plumbing: [B, D] -> [1, B, D] == permute(1, 0, 2).
    return out[None]


def make_sinusoidal_pe(max_len, d_model):
    """PositionalEncoding.pe buffer, returned as [max_len, d_model]
    (the PyTorch buffer is this with an extra size-1 middle axis)."""
    position = np.arange(max_len, dtype=np.float32)[:, None]
    div_term = np.exp(
        np.arange(0, d_model, 2, dtype=np.float32) * (-np.log(10000.0) / d_model)
    )
    pe = np.zeros((max_len, d_model), dtype=np.float32)
    pe[:, 0::2] = np.sin(position * div_term)
    pe[:, 1::2] = np.cos(position * div_term)
    return jnp.asarray(pe)


def init_linear(key, fan_in, fan_out):
    """Deterministic PyTorch-style Linear init; weight returned as [in, out]."""
    kw, kb = jax.random.split(key)
    bound = 1.0 / np.sqrt(fan_in)
    w = jax.random.uniform(kw, (fan_in, fan_out), jnp.float32, -bound, bound)
    b = jax.random.uniform(kb, (1, fan_out), jnp.float32, -bound, bound)
    return w, b


if __name__ == "__main__":
    latent_dim = 32
    max_len = 64
    batch = 8

    key = jax.random.PRNGKey(0)
    k1, k2, kt = jax.random.split(key, 3)

    pe = make_sinusoidal_pe(max_len, latent_dim)          # [64, 32]
    w1, b1 = init_linear(k1, latent_dim, latent_dim)
    w2, b2 = init_linear(k2, latent_dim, latent_dim)
    # Concatenation done once at parameter setup (hoisted out of the per-call
    # path) — these are the stored params fed to every forward.
    w_cat = jnp.concatenate([w1, w2], axis=0)             # [64, 32]
    b_cat = jnp.concatenate([b1, b2], axis=0)             # [2, 32]

    timesteps = jax.random.randint(kt, (batch,), 0, max_len, dtype=jnp.int32)

    out = timestep_embedder_forward(timesteps, pe, w_cat, b_cat)
    out = jax.block_until_ready(out)

    # Exact-f32 numpy reference of the full module semantics (avoids any
    # TPU default-matmul truncation in the reference path).
    pe_np = np.asarray(pe)
    w1_np, b1_np = np.asarray(w1), np.asarray(b1)
    w2_np, b2_np = np.asarray(w2), np.asarray(b2)
    ts_np = np.asarray(timesteps)

    x_ref = pe_np[ts_np]                                   # [B, D] gather
    h_ref = x_ref @ w1_np + b1_np
    h_ref = h_ref / (1.0 + np.exp(-h_ref)) * 1.0           # SiLU = h * sigmoid(h)
    h_ref = (x_ref @ w1_np + b1_np)
    h_ref = h_ref * (1.0 / (1.0 + np.exp(-h_ref)))
    y_ref = (h_ref @ w2_np + b2_np)[None]                  # [1, B, D] == permute(1,0,2)

    assert out.shape == (1, batch, latent_dim)
    np.testing.assert_allclose(np.asarray(out), y_ref, rtol=1e-5, atol=1e-5)

    print("KERNEL_OK")
</pallas_src>

<mosaic_0001>
module attributes {stable_mosaic.version = 11 : i64} {
  func.func @_timestep_embedder_kernel(%arg0: memref<8x1xi32, #tpu.memory_space<vmem>>, %arg1: memref<64x32xf32, #tpu.memory_space<vmem>>, %arg2: memref<64x32xf32, #tpu.memory_space<vmem>>, %arg3: memref<2x32xf32, #tpu.memory_space<vmem>>, %arg4: memref<8x32xf32, #tpu.memory_space<vmem>>) attributes {dimension_semantics = [], scalar_prefetch = 0 : i64, scratch_operands = 0 : i64, tpu.core_type = #tpu.core_type<tc>} {
    %c0 = arith.constant 0 : index
    %c0_0 = arith.constant 0 : index
    %0 = vector.load %arg0[%c0, %c0_0] : memref<8x1xi32, #tpu.memory_space<vmem>>, vector<8x1xi32>
    %1 = tpu.iota {dimensions = array<i32: 1>} : vector<8x64xi32>
    %2 = vector.broadcast %0 : vector<8x1xi32> to vector<8x64xi32>
    %3 = arith.cmpi eq, %1, %2 : vector<8x64xi32>
    %cst = arith.constant 1.000000e+00 : f32
    %cst_1 = arith.constant 0.000000e+00 : f32
    %4 = vector.broadcast %cst : f32 to vector<8x64xf32>
    %5 = vector.broadcast %cst_1 : f32 to vector<8x64xf32>
    %6 = arith.select %3, %4, %5 : vector<8x64xi1>, vector<8x64xf32>
    %c0_2 = arith.constant 0 : index
    %c0_3 = arith.constant 0 : index
    %7 = vector.load %arg1[%c0_2, %c0_3] : memref<64x32xf32, #tpu.memory_space<vmem>>, vector<64x32xf32>
    %cst_4 = arith.constant dense<0.000000e+00> : vector<8x32xf32>
    %8 = tpu.matmul %6, %7, %cst_4 {dimension_numbers = #tpu.dot_dimension_numbers<[1], [0], [0], [1], [0, 0, 1, 1], [], []>, precision = #tpu.contract_precision<fp32>} : vector<8x64xf32>, vector<64x32xf32>, vector<8x32xf32> -> vector<8x32xf32>
    %c0_5 = arith.constant 0 : index
    %c0_6 = arith.constant 0 : index
    %9 = vector.load %arg2[%c0_5, %c0_6] : memref<64x32xf32, #tpu.memory_space<vmem>>, vector<32x32xf32>
    %c32 = arith.constant 32 : index
    %c0_7 = arith.constant 0 : index
    %10 = vector.load %arg2[%c32, %c0_7] : memref<64x32xf32, #tpu.memory_space<vmem>>, vector<32x32xf32>
    %c0_8 = arith.constant 0 : index
    %c0_9 = arith.constant 0 : index
    %11 = vector.load %arg3[%c0_8, %c0_9] : memref<2x32xf32, #tpu.memory_space<vmem>>, vector<1x32xf32>
    %c1 = arith.constant 1 : index
    %c0_10 = arith.constant 0 : index
    %12 = vector.load %arg3[%c1, %c0_10] : memref<2x32xf32, #tpu.memory_space<vmem>>, vector<1x32xf32>
    %cst_11 = arith.constant dense<0.000000e+00> : vector<8x32xf32>
    %13 = tpu.matmul %8, %9, %cst_11 {dimension_numbers = #tpu.dot_dimension_numbers<[1], [0], [0], [1], [0, 0, 1, 1], [], []>, precision = #tpu.contract_precision<fp32>} : vector<8x32xf32>, vector<32x32xf32>, vector<8x32xf32> -> vector<8x32xf32>
    %14 = vector.broadcast %11 : vector<1x32xf32> to vector<8x32xf32>
    %15 = arith.addf %13, %14 : vector<8x32xf32>
    %16 = arith.negf %15 : vector<8x32xf32>
    %17 = math.exp %16 : vector<8x32xf32>
    %cst_12 = arith.constant 1.000000e+00 : f32
    %18 = vector.broadcast %cst_12 : f32 to vector<8x32xf32>
    %19 = arith.addf %18, %17 : vector<8x32xf32>
    %20 = arith.divf %18, %19 : vector<8x32xf32>
    %21 = arith.mulf %15, %20 : vector<8x32xf32>
    %cst_13 = arith.constant dense<0.000000e+00> : vector<8x32xf32>
    %22 = tpu.matmul %21, %10, %cst_13 {dimension_numbers = #tpu.dot_dimension_numbers<[1], [0], [0], [1], [0, 0, 1, 1], [], []>, precision = #tpu.contract_precision<fp32>} : vector<8x32xf32>, vector<32x32xf32>, vector<8x32xf32> -> vector<8x32xf32>
    %23 = vector.broadcast %12 : vector<1x32xf32> to vector<8x32xf32>
    %24 = arith.addf %22, %23 : vector<8x32xf32>
    %c0_14 = arith.constant 0 : index
    %c0_15 = arith.constant 0 : index
    %25 = vector.load %arg4[%c0_14, %c0_15] : memref<8x32xf32, #tpu.memory_space<vmem>>, vector<8x32xf32>
    tpu.vector_store %arg4[%c0_14, %c0_15], %24 {strides = array<i32>} : memref<8x32xf32, #tpu.memory_space<vmem>>, vector<8x32xf32>,
    return
  }
}

</mosaic_0001>

<bundles_post_ra>
// kernel: tpu_custom_call.1
= control target key start
LH: loop header
LB: loop body
LE: loop exit
PB: predicated region body
PF: predicated region fallthrough
CT: control target
= control target key end

     0   :  { %v741_v3 = vmov 0   ;;  %s910_s0 = inlined_call_operand.vmem [shape: s32[8,1], index: 0, kind: input, shape index: {}]   ;;  %s911_s1 = inlined_call_operand.vmem [shape: f32[64,32], index: 1, kind: input, shape index: {}]   ;;  %s912_s2 = inlined_call_operand.vmem [shape: f32[64,32], index: 2, kind: input, shape index: {}]   ;;  %s913_s3 = inlined_call_operand.vmem [shape: f32[2,32], index: 3, kind: input, shape index: {}]   ;;  %s914_s4 = inlined_call_operand.hbm [shape: f32[8,32], index: 4, kind: output, shape index: {}]  }
   0x1   :  { %v18_v0 = vld [vmem:[%s910_s0] sm:$0xff]  ;;  %v33_v1 = vld [vmem:[%s911_s1 + $0x38] sm:$0xff]  ;;  %v32_v2 = vld [vmem:[%s911_s1 + $0x30] sm:$0xff]  ;;  %708 = vset.pattern.permute.xlu0 %v741_v3 }
   0x2   :  { %v778_v4 = vand.u32 4294901760, %v33_v1  ;;  %v780_v5 = vand.u32 4294901760, %v32_v2  ;;  %v31_v6 = vld [vmem:[%s911_s1 + $0x28] sm:$0xff]  ;;  %v30_v7 = vld [vmem:[%s911_s1 + $0x20] sm:$0xff]  ;;  %v29_v8 = vld [vmem:[%s911_s1 + $0x18] sm:$0xff]  ;;  %22 = vperm.xlu0 %708, %v18_v0  }
   0x3   :  { %v791_v9 = vand.u32 4294901760, %v31_v6  ;;  %v793_v10 = vand.u32 4294901760, %v30_v7  ;;  %v795_v11 = vand.u32 4294901760, %v29_v8  ;;  %v28_v12 = vld [vmem:[%s911_s1 + $0x10] sm:$0xff]  ;;  %v27_v13 = vld [vmem:[%s911_s1 + $0x8] sm:$0xff]  ;;  %v26_v14 = vld [vmem:[%s911_s1] sm:$0xff] }
   0x4   :  { %v807_v15 = vsub.f32 %v33_v1, %v778_v4  ;;  %v810_v16 = vsub.f32 %v32_v2, %v780_v5  ;;  %47 = vmatpush.msra.mxu0 %v778_v4  ;;  %v813_v17 = vand.u32 4294901760, %v28_v12  ;;  %v815_v18 = vand.u32 4294901760, %v27_v13  ;;  %179 = vmatpush.msra.mxu3 %v778_v4 }
   0x5   :  { %v819_v19 = vsub.f32 %v31_v6, %v791_v9  ;;  %v822_v20 = vsub.f32 %v30_v7, %v793_v10  ;;  %v825_v21 = vsub.f32 %v29_v8, %v795_v11  ;;  %v827_v22 = vand.u32 4294901760, %v26_v14 }
   0x6   :  { %9 = vsyncpa [#allocation3], 0  ;;  %v81_v23 = vand.u32 4294901760, %v807_v15  ;;  %v87_v24 = vand.u32 4294901760, %v810_v16  ;;  %v832_v25 = vsub.f32 %v28_v12, %v813_v17  ;;  %142 = vmatpush.msra.mxu2 %v807_v15  ;;  %49 = vmatpush.msra.mxu0 %v780_v5  ;;  %v116_v31 = vsub.f32 %v27_v13, %v815_v18  ;;  %v278_v60 = vld [vmem:[%s912_s2 + $0x18] sm:$0xff]  ;;  %v277_v62 = vld [vmem:[%s912_s2 + $0x10] sm:$0xff] }
   0x7   :  { %v93_v26 = vand.u32 4294901760, %v819_v19  ;;  %v99_v27 = vand.u32 4294901760, %v822_v20  ;;  %181 = vmatpush.msra.mxu3 %v780_v5  ;;  %v105_v30 = vand.u32 4294901760, %v825_v21  ;;  %v122_v33 = vsub.f32 %v26_v14, %v827_v22  ;;  %v276_v1 = vld [vmem:[%s912_s2 + $0x8] sm:$0xff]  ;;  %s743_s0 = smov [#allocation2]   ;;  %s692_s27 = sshll.u32 %s914_s4, 4  ;;  %s693_s27 = int_to_ptr.hbm [resolvable:$true] %s692_s27 }
   0x8   :  { %v82_v28 = vsub.f32 %v807_v15, %v81_v23  ;;  %v88_v29 = vsub.f32 %v810_v16, %v87_v24  ;;  %145 = vmatpush.msra.mxu2 %v810_v16  ;;  %51 = vmatpush.msra.mxu0 %v791_v9  ;;  %v111_v37 = vand.u32 4294901760, %v832_v25  ;;  %v117_v40 = vand.u32 4294901760, %v116_v31  ;;  %s690_s24 = sshll.u32 %s743_s0, 4  ;;  %s691_s24 = int_to_ptr.vmem [resolvable:$true] %s690_s24 }
   0x9   :  { %v94_v32 = vsub.f32 %v819_v19, %v93_v26  ;;  %183 = vmatpush.msra.mxu3 %v791_v9  ;;  %v100_v36 = vsub.f32 %v822_v20, %v99_v27  ;;  %v106_v39 = vsub.f32 %v825_v21, %v105_v30  ;;  %v123_v43 = vand.u32 4294901760, %v122_v33 }
   0xa   :  { %v83_v34 = vand.u32 4294901760, %v82_v28  ;;  %v89_v35 = vand.u32 4294901760, %v88_v29  ;;  %148 = vmatpush.msra.mxu2 %v819_v19  ;;  %53 = vmatpush.msra.mxu0 %v793_v10  ;;  %v112_v42 = vsub.f32 %v832_v25, %v111_v37  ;;  %v118_v45 = vsub.f32 %v116_v31, %v117_v40 }
   0xb   :  { %185 = vmatpush.msra.mxu3 %v793_v10  ;;  %v95_v38 = vand.u32 4294901760, %v94_v32  ;;  %v101_v41 = vand.u32 4294901760, %v100_v36  ;;  %v107_v44 = vand.u32 4294901760, %v106_v39  ;;  %v124_v47 = vsub.f32 %v122_v33, %v123_v43 }
   0xc   :  { %84 = vmatpush.msra.mxu1 %v83_v34  ;;  %151 = vmatpush.msra.mxu2 %v822_v20  ;;  %v113_v46 = vand.u32 4294901760, %v112_v42  ;;  %v119_v48 = vand.u32 4294901760, %v118_v45  ;;  %v19_v50 = vlaneseq  ;;  %vm34_vm0 = vcmask 523264  }
   0xd   :  { %55 = vmatpush.msra.mxu0 %v795_v11  ;;  %187 = vmatpush.msra.mxu3 %v795_v11  ;;  %v125_v49 = vand.u32 4294901760, %v124_v47  ;;  %v742_v53 = vmov 0.0   ;;  %v302_v61 = vand.u32 4294901760, %v278_v60  ;;  %v304_v0 = vand.u32 4294901760, %v277_v62 }
   0xe   :  { %90 = vmatpush.msra.mxu1 %v89_v35  ;;  %154 = vmatpush.msra.mxu2 %v825_v21  ;;  %v20_v51 = vand.u32 127, %v19_v50  ;;  %vm286_vm2 = vcmask 261120  }
   0xf   :  { %57 = vmatpush.msra.mxu0 %v813_v17  ;;  %189 = vmatpush.msra.mxu3 %v813_v17  ;;  %v332_v63 = vsub.f32 %v278_v60, %v302_v61  ;;  %v338_v3 = vsub.f32 %v277_v62, %v304_v0 }
  0x10   :  { %96 = vmatpush.msra.mxu1 %v95_v38  ;;  %157 = vmatpush.msra.mxu2 %v832_v25 }
  0x11   :  { %59 = vmatpush.msra.mxu0 %v815_v18  ;;  %191 = vmatpush.msra.mxu3 %v815_v18  ;;  %v333_v2 = vand.u32 4294901760, %v332_v63  ;;  %v339_v7 = vand.u32 4294901760, %v338_v3 }
  0x12   :  { %102 = vmatpush.msra.mxu1 %v101_v41  ;;  %160 = vmatpush.msra.mxu2 %v116_v31 }
  0x13   :  { %61 = vmatpush.msra.mxu0 %v827_v22  ;;  %193 = vmatpush.msra.mxu3 %v827_v22  ;;  %v334_v6 = vsub.f32 %v332_v63, %v333_v2 }
  0x14   :  { %108 = vmatpush.msra.mxu1 %v107_v44  ;;  %163 = vmatpush.msra.mxu2 %v122_v33 }
  0x15   :  { %212 = vmatpush.msrb.mxu0 %v81_v23 }
  0x16   :  { %114 = vmatpush.msra.mxu1 %v113_v46  ;;  %303 = vmatpush.msrb.mxu2 %v302_v61  ;;  %v280_v46 = vld [vmem:[%s912_s2 + $0x28] sm:$0xff] }
  0x17   :  { %216 = vmatpush.msrb.mxu0 %v87_v24 }
  0x18   :  { %120 = vmatpush.msra.mxu1 %v119_v48  ;;  %305 = vmatpush.msrb.mxu2 %v304_v0 }
  0x19   :  { %220 = vmatpush.msrb.mxu0 %v93_v26 }
  0x1a   :  { %126 = vmatpush.msra.mxu1 %v125_v49  ;;  %v515_v49 = vand.u32 4294901760, %v280_v46 }
  0x1b   :  { %224 = vmatpush.msrb.mxu0 %v99_v27 }
  0x1c   :  { %255 = vmatpush.msrb.mxu1 %v778_v4  ;;  %v306_v4 = vand.u32 4294901760, %v276_v1 }
  0x1d   :  { %228 = vmatpush.msrb.mxu0 %v105_v30 }
  0x1e   :  { %257 = vmatpush.msrb.mxu1 %v780_v5  ;;  %v275_v5 = vld [vmem:[%s912_s2] sm:$0xff]  ;;  %v344_v8 = vsub.f32 %v276_v1, %v306_v4  ;;  %307 = vmatpush.msrb.mxu2 %v306_v4 }
  0x1f   :  { %232 = vmatpush.msrb.mxu0 %v111_v37  ;;  %v709_v37 = vld [vmem:[%s913_s3] ss:$0 sm:$0xff] }
  0x20   :  { %259 = vmatpush.msrb.mxu1 %v791_v9  ;;  %v308_v9 = vand.u32 4294901760, %v275_v5  ;;  %v345_v12 = vand.u32 4294901760, %v344_v8 }
  0x21   :  { %236 = vmatpush.msrb.mxu0 %v117_v40  ;;  %v282_v40 = vld [vmem:[%s912_s2 + $0x38] sm:$0xff] }
  0x22   :  { %261 = vmatpush.msrb.mxu1 %v793_v10  ;;  %v335_v10 = vand.u32 4294901760, %v334_v6  ;;  %v350_v13 = vsub.f32 %v275_v5, %v308_v9  ;;  %309 = vmatpush.msrb.mxu2 %v308_v9  ;;  %v346_v15 = vsub.f32 %v344_v8, %v345_v12  ;;  %v511_v41 = vand.u32 4294901760, %v282_v40 }
  0x23   :  { %240 = vmatpush.msrb.mxu0 %v123_v43  ;;  %v281_v43 = vld [vmem:[%s912_s2 + $0x30] sm:$0xff] }
  0x24   :  { %263 = vmatpush.msrb.mxu1 %v795_v11  ;;  %v340_v11 = vsub.f32 %v338_v3, %v339_v7  ;;  %336 = vmatpush.msrb.mxu3 %v335_v10  ;;  %v351_v16 = vand.u32 4294901760, %v350_v13  ;;  %v541_v44 = vsub.f32 %v282_v40, %v511_v41  ;;  %v513_v45 = vand.u32 4294901760, %v281_v43 }
  0x26   :  { %265 = vmatpush.msrb.mxu1 %v813_v17  ;;  %v341_v14 = vand.u32 4294901760, %v340_v11  ;;  %v347_v17 = vand.u32 4294901760, %v346_v15  ;;  %v542_v47 = vand.u32 4294901760, %v541_v44  ;;  %v547_v48 = vsub.f32 %v281_v43, %v513_v45 }
  0x28   :  { %267 = vmatpush.msrb.mxu1 %v815_v18  ;;  %342 = vmatpush.msrb.mxu3 %v341_v14  ;;  %v352_v18 = vsub.f32 %v350_v13, %v351_v16 }
  0x2a   :  { %269 = vmatpush.msrb.mxu1 %v827_v22  ;;  %348 = vmatpush.msrb.mxu3 %v347_v17  ;;  %v353_v19 = vand.u32 4294901760, %v352_v18 }
  0x2c   :  { %354 = vmatpush.msrb.mxu3 %v353_v19 }
  0x74   :  { %v23_v52 = vpop.permute.xlu0 %22 }
  0x75   :  { %vm24_vm1 = vcmp.eq.s32.totalorder %v20_v51, %v23_v52  ;;  %v279_v51 = vld [vmem:[%s912_s2 + $0x20] sm:$0xff] }
  0x76   :  { %v25_v54 = vsel %vm24_vm1, 1.0, %v742_v53  ;;  %v543_v53 = vsub.f32 %v541_v44, %v542_v47 }
  0x77   :  { %701 = vmatmul.msk.f32.vlgmr.msra.gmra.mxu1 %vm34_vm0, %v25_v54  ;;  %v36_v55 = vsel %vm34_vm0, %v25_v54, 0 }
  0x78   :  { %v63_v56 = vsub.f32 %v36_v55, %v36_v55  ;;  %463 = vmatpush.msra.mxu1 %v302_v61  ;;  %v553_v55 = vsub.f32 %v280_v46, %v515_v49 }
  0x7a   :  { %166 = vmatmul.f32.vlgmr.msra.gmra.mxu2 %v63_v56  ;;  %v64_v57 = vand.u32 4294901760, %v63_v56  ;;  %465 = vmatpush.msra.mxu1 %v304_v0 }
  0x7b   :  { %374 = vmatpush.msra.mxu2 %v332_v63 }
  0x7c   :  { %197 = vmatmul.f32.vlgmr.msra.gmra.mxu3 %v64_v57  ;;  %v65_v58 = vsub.f32 %v63_v56, %v64_v57  ;;  %467 = vmatpush.msra.mxu1 %v306_v4  ;;  %v517_v56 = vand.u32 4294901760, %v279_v51 }
  0x7d   :  { %377 = vmatpush.msra.mxu2 %v338_v3  ;;  %403 = vmatpush.msra.mxu3 %v302_v61  ;;  %v554_v61 = vand.u32 4294901760, %v553_v55 }
  0x7e   :  { %v66_v59 = vand.u32 4294901760, %v65_v58  ;;  %469 = vmatpush.msra.mxu1 %v308_v9  ;;  %v559_v62 = vsub.f32 %v279_v51, %v517_v56 }
  0x7f   :  { %703 = vmatmul.msk.f32.vlgmr.msrb.gmra.mxu1 %vm34_vm0, %v25_v54  ;;  %380 = vmatpush.msra.mxu2 %v344_v8 }
  0x80   :  { %67 = vmatmul.f32.vlgmr.msra.gmra.mxu0 %v66_v59  ;;  %405 = vmatpush.msra.mxu3 %v304_v0  ;;  %v544_v59 = vand.u32 4294901760, %v543_v53  ;;  %v560_v3 = vand.u32 4294901760, %v559_v62 }
  0x81   :  { %432 = vmatpush.msra.mxu0 %v333_v2  ;;  %383 = vmatpush.msra.mxu2 %v350_v13  ;;  %v555_v2 = vsub.f32 %v553_v55, %v554_v61 }
  0x82   :  { %407 = vmatpush.msra.mxu3 %v306_v4  ;;  %612 = vmatpush.msrb.mxu1 %v511_v41 }
  0x83   :  { %436 = vmatpush.msra.mxu0 %v339_v7  ;;  %v556_v6 = vand.u32 4294901760, %v555_v2  ;;  %v561_v7 = vsub.f32 %v559_v62, %v560_v3 }
  0x84   :  { %409 = vmatpush.msra.mxu3 %v308_v9  ;;  %614 = vmatpush.msrb.mxu1 %v513_v45 }
  0x85   :  { %440 = vmatpush.msra.mxu0 %v345_v12  ;;  %v562_v9 = vand.u32 4294901760, %v561_v7 }
  0x86   :  { %616 = vmatpush.msrb.mxu1 %v515_v49 }
  0x87   :  { %444 = vmatpush.msra.mxu0 %v351_v16 }
  0x88   :  { %702 = vmatmul.msk.f32.vlgmr.msrb.gmra.mxu0 %vm34_vm0, %v25_v54  ;;  %v548_v54 = vand.u32 4294901760, %v547_v48  ;;  %618 = vmatpush.msrb.mxu1 %v517_v56 }
  0x89   :  { %583 = vmatpush.msrb.mxu0 %v541_v44 }
  0x8a   :  { %v549_v60 = vsub.f32 %v547_v48, %v548_v54 }
  0x8b   :  { %586 = vmatpush.msrb.mxu0 %v547_v48 }
  0x8c   :  { %v550_v1 = vand.u32 4294901760, %v549_v60 }
  0x8d   :  { %589 = vmatpush.msrb.mxu0 %v553_v55 }
  0x8f   :  { %592 = vmatpush.msrb.mxu0 %v559_v62 }
  0xf4   :  { %v129_v20 = vpop.f32.mrf.mxu1 }
  0xfc   :  { %v272_v29 = vpop.f32.mrf.mxu1 }
  0xfd   :  { %v68_v21 = vpop.f32.mrf.mxu0  ;;  %v167_v23 = vpop.f32.mrf.mxu2 }
  0xfe   :  { %v130_v22 = vadd.f32 %v129_v20, %v68_v21 }
  0xff   :  { %v198_v25 = vpop.f32.mrf.mxu3 }
 0x100   :  { %v168_v24 = vadd.f32 %v167_v23, %v130_v22 }
 0x102   :  { %v199_v26 = vadd.f32 %v198_v25, %v168_v24 }
 0x105   :  { %v243_v27 = vpop.f32.mrf.mxu0 }
 0x106   :  { %v244_v28 = vadd.f32 %v243_v27, %v199_v26 }
 0x108   :  { %v273_v30 = vadd.f32 %v272_v29, %v244_v28 }
 0x10a   :  { %v288_v31 = vsel %vm286_vm2, %v273_v30, 0  ;;  %v710_v30 = vld [vmem:[%s913_s3 + $0x1] ss:$0 sm:$0xff] }
 0x10b   :  { %v310_v32 = vand.u32 4294901760, %v288_v31 }
 0x10d   :  { %v311_v33 = vsub.f32 %v288_v31, %v310_v32  ;;  %356 = vmatmul.f32.vlgmr.msrb.gmra.mxu3 %v310_v32  ;;  %446 = vmatmul.f32.vlgmr.msra.gmra.mxu0 %v310_v32 }
 0x10e   :  { %471 = vmatmul.f32.vlgmr.msra.gmra.mxu1 %v310_v32  ;;  %545 = vmatpush.msrb.mxu3 %v544_v59 }
 0x10f   :  { %v312_v34 = vand.u32 4294901760, %v311_v33 }
 0x110   :  { %551 = vmatpush.msrb.mxu3 %v550_v1 }
 0x111   :  { %v313_v35 = vsub.f32 %v311_v33, %v312_v34 }
 0x112   :  { %557 = vmatpush.msrb.mxu3 %v556_v6 }
 0x113   :  { %v314_v36 = vand.u32 4294901760, %v313_v35 }
 0x114   :  { %563 = vmatpush.msrb.mxu3 %v562_v9 }
 0x115   :  { %315 = vmatmul.f32.vlgmr.msrb.gmra.mxu2 %v314_v36  ;;  %413 = vmatmul.f32.vlgmr.msra.gmra.mxu3 %v312_v34 }
 0x116   :  { %512 = vmatpush.msrb.mxu2 %v511_v41  ;;  %672 = vmatpush.msra.mxu3 %v511_v41 }
 0x118   :  { %514 = vmatpush.msrb.mxu2 %v513_v45  ;;  %674 = vmatpush.msra.mxu3 %v513_v45 }
 0x11a   :  { %516 = vmatpush.msrb.mxu2 %v515_v49  ;;  %676 = vmatpush.msra.mxu3 %v515_v49 }
 0x11c   :  { %518 = vmatpush.msrb.mxu2 %v517_v56  ;;  %678 = vmatpush.msra.mxu3 %v517_v56 }
 0x11d   :  { %386 = vmatmul.f32.vlgmr.msra.gmra.mxu2 %v311_v33 }
 0x11e   :  { %641 = vmatpush.msra.mxu2 %v542_v47 }
 0x120   :  { %645 = vmatpush.msra.mxu2 %v548_v54 }
 0x122   :  { %649 = vmatpush.msra.mxu2 %v554_v61 }
 0x124   :  { %653 = vmatpush.msra.mxu2 %v560_v3 }
 0x18a   :  { %v447_v0 = vpop.f32.mrf.mxu0 }
 0x18b   :  { %v472_v5 = vpop.f32.mrf.mxu1 }
 0x190   :  { %v357_v38 = vpop.f32.mrf.mxu3 }
 0x198   :  { %v316_v39 = vpop.f32.mrf.mxu2  ;;  %v414_v58 = vpop.f32.mrf.mxu3 }
 0x199   :  { %v317_v42 = vadd.f32 %v709_v37, %v316_v39 }
 0x19b   :  { %v358_v50 = vadd.f32 %v357_v38, %v317_v42 }
 0x1a0   :  { %v387_v52 = vpop.f32.mrf.mxu2 }
 0x1a1   :  { %v388_v57 = vadd.f32 %v387_v52, %v358_v50 }
 0x1a3   :  { %v415_v63 = vadd.f32 %v414_v58, %v388_v57 }
 0x1a5   :  { %v448_v4 = vadd.f32 %v447_v0, %v415_v63 }
 0x1a7   :  { %v473_v8 = vadd.f32 %v472_v5, %v448_v4 }
 0x1a9   :  { %v704_v10 = vmul.f32 -1.442695, %v473_v8 }
 0x1ab   :  { %711 = vpow2.f32 %v704_v10 }
 0x1b1   :  { %v712_v11 = vpop.eup %711 }
 0x1b2   :  { %v478_v12 = vadd.f32 1.0, %v712_v11 }
 0x1b4   :  { %713 = vrcp.f32 %v478_v12  ;;  %v490_v16 = vand.u32 2147483648, %v478_v12  ;;  %v488_v18 = vand.u32 2147483647, %v478_v12  ;;  %vm484_vm4 = vweird.f32 %v478_v12 }
 0x1b6   :  { %v491_v20 = vor.u32 1.1754944e-38, %v490_v16  ;;  %vm489_vm6 = vcmp.eq.f32.partialorder %v488_v18, 8.507059e+37 }
 0x1ba   :  { %v714_v13 = vpop.eup %713 }
 0x1bb   :  { %v480_v14 = vmul.f32 %v714_v13, %v478_v12  ;;  %vm485_vm3 = vweird.f32 %v714_v13 }
 0x1bc   :  { %vm486_vm5 = vmor %vm484_vm4, %vm485_vm3 }
 0x1bd   :  { %v481_v15 = vsub.f32 1.0, %v480_v14 }
 0x1bf   :  { %v482_v17 = vmul.f32 %v714_v13, %v481_v15 }
 0x1c1   :  { %v483_v19 = vadd.f32 %v714_v13, %v482_v17 }
 0x1c3   :  { %v487_v21 = vsel %vm486_vm5, %v714_v13, %v483_v19 }
 0x1c4   :  { %v492_v22 = vsel %vm489_vm6, %v491_v20, %v487_v21 }
 0x1c5   :  { %v494_v23 = vmul.f32 %v492_v22, %v473_v8 }
 0x1c7   :  { %v497_v24 = vsel %vm286_vm2, %v494_v23, 0 }
 0x1c8   :  { %v519_v25 = vand.u32 4294901760, %v497_v24 }
 0x1ca   :  { %565 = vmatmul.f32.vlgmr.msrb.gmra.mxu3 %v519_v25  ;;  %v520_v26 = vsub.f32 %v497_v24, %v519_v25 }
 0x1cc   :  { %595 = vmatmul.f32.vlgmr.msrb.gmra.mxu0 %v520_v26  ;;  %v521_v27 = vand.u32 4294901760, %v520_v26 }
 0x1ce   :  { %622 = vmatmul.f32.vlgmr.msrb.gmra.mxu1 %v521_v27  ;;  %v522_v28 = vsub.f32 %v520_v26, %v521_v27 }
 0x1d0   :  { %v523_v29 = vand.u32 4294901760, %v522_v28 }
 0x1d2   :  { %524 = vmatmul.f32.vlgmr.msrb.gmra.mxu2 %v523_v29  ;;  %680 = vmatmul.f32.vlgmr.msra.gmra.mxu3 %v519_v25 }
 0x1da   :  { %655 = vmatmul.f32.vlgmr.msra.gmra.mxu2 %v519_v25 }
 0x249   :  { %v596_v35 = vpop.f32.mrf.mxu0 }
 0x24b   :  { %v623_v37 = vpop.f32.mrf.mxu1 }
 0x24d   :  { %v566_v31 = vpop.f32.mrf.mxu3 }
 0x255   :  { %v525_v32 = vpop.f32.mrf.mxu2  ;;  %v681_v41 = vpop.f32.mrf.mxu3 }
 0x256   :  { %v526_v33 = vadd.f32 %v710_v30, %v525_v32 }
 0x258   :  { %v567_v34 = vadd.f32 %v566_v31, %v526_v33 }
 0x25a   :  { %v597_v36 = vadd.f32 %v596_v35, %v567_v34 }
 0x25c   :  { %v624_v38 = vadd.f32 %v623_v37, %v597_v36 }
 0x25d   :  { %v656_v39 = vpop.f32.mrf.mxu2 }
 0x25e   :  { %v657_v40 = vadd.f32 %v656_v39, %v624_v38 }
 0x260   :  { %v682_v42 = vadd.f32 %v681_v41, %v657_v40 }
 0x262   :  { %684 = vst.msk [vmem:[#allocation2] sm:$0xff] %vm286_vm2, %v682_v42 }
 0x263   :  { %695 = dma.vmem_to_hbm [thread:$0]  %s691_s24, 128, %s693_s27, [#allocation3]  }
 0x264   :  { %739 = dma.done.wait [#allocation3], 128  }
 0x265   :  { %740 = vsyncadd [#allocation3], 4294967168 }
 0x266   :  { %700 = vsyncpa [#allocation3], 1 }

</bundles_post_ra>
